<compile_context>
chip_gen: v6e
topology: v6e:2x2x1
jax: 0.10.0
libtpu: 0.0.40
codegen_flags: <defaults>
</compile_context>

<pallas_src>
import functools

import jax
import jax.numpy as jnp
import numpy as np
from jax import lax
from jax.experimental import pallas as pl
from jax.experimental.pallas import tpu as pltpu


def _round_up(x, m):
    return ((x + m - 1) // m) * m


# ----------------------------- Pallas kernel ------------------------------ #
def _glu_matmul_kernel(p_ref, wa_ref, wb_ref, ba_ref, bb_ref, o_ref,
                       acc_a, acc_b):
    # grid = (M tiles, OC tiles, K tiles); K is the reduction axis (last).
    k = pl.program_id(2)

    @pl.when(k == 0)
    def _():
        acc_a[...] = jnp.zeros_like(acc_a)
        acc_b[...] = jnp.zeros_like(acc_b)

    # bf16 MXU inputs, f32 accumulation.
    acc_a[...] += jnp.dot(p_ref[...], wa_ref[...],
                          preferred_element_type=jnp.float32)
    acc_b[...] += jnp.dot(p_ref[...], wb_ref[...],
                          preferred_element_type=jnp.float32)

    @pl.when(k == pl.num_programs(2) - 1)
    def _():
        a = acc_a[...] + ba_ref[...]          # linear half  + bias
        g = acc_b[...] + bb_ref[...]          # gate half    + bias
        o_ref[...] = (a * jax.nn.sigmoid(g)).astype(o_ref.dtype)


# ------------------------------ host wrapper ------------------------------ #
def _im2col(x, kh, kw, stride, padding):
    """x: [N, C, H, W] -> patches [N*OH*OW, C*KH*KW] (col order = c, kh, kw)."""
    n, c, h, w = x.shape
    oh = (h + 2 * padding - kh) // stride + 1
    ow = (w + 2 * padding - kw) // stride + 1
    xp = jnp.pad(x, ((0, 0), (0, 0), (padding, padding), (padding, padding)))
    cols = jnp.stack(
        [
            xp[:, :, i : i + oh * stride : stride, j : j + ow * stride : stride]
            for i in range(kh)
            for j in range(kw)
        ],
        axis=2,
    )  # [N, C, KH*KW, OH, OW]
    cols = cols.transpose(0, 3, 4, 1, 2).reshape(n * oh * ow, c * kh * kw)
    return cols, oh, ow


@functools.partial(jax.jit, static_argnames=("stride", "padding"))
def glu2d_forward(x, weight, bias, *, stride=1, padding=0):
    """Forward pass of Glu2d.

    x:      [N, C, H, W]        (NCHW, like PyTorch)
    weight: [2*OC, C, KH, KW]   (OIHW, like nn.Conv2d)
    bias:   [2*OC]
    returns [N, OC, OH, OW]
    """
    n, c, _, _ = x.shape
    oc2, cin, kh, kw = weight.shape
    assert cin == c and oc2 % 2 == 0
    oc = oc2 // 2

    patches, oh, ow = _im2col(x, kh, kw, stride, padding)        # JAX glue
    kdim = c * kh * kw
    m = n * oh * ow

    # --------------------------- tile selection --------------------------- #
    # Rows (M): big tiles amortize per-step overhead; bf16 packs 2 rows per
    # sublane, so the small-M fallback rounds to a multiple of 16.
    tm = 512 if m >= 512 else max(16, _round_up(m, 16))
    m_pad = _round_up(m, tm)

    # Reduction (K): pad to a lane-aligned tile; tile when K is large so VMEM
    # does not scale with C*KH*KW.
    k_pad = _round_up(kdim, 128)
    if k_pad > 512:
        tk = 512
        k_pad = _round_up(kdim, tk)
    else:
        tk = k_pad

    # Output channels: pad to a multiple of 128 so output stores are
    # lane-dense; tile if the padded width is large.
    oc_pad = _round_up(oc, 128)
    tn = 128 if oc_pad > 256 else oc_pad

    # ----------------------------- operands -------------------------------- #
    patches = jnp.pad(patches, ((0, m_pad - m), (0, k_pad - kdim)))
    patches = patches.astype(jnp.bfloat16)

    w2d = weight.reshape(oc2, kdim)                              # [2*OC, K]
    wa = jnp.pad(w2d[:oc].T, ((0, k_pad - kdim), (0, oc_pad - oc)))
    wb = jnp.pad(w2d[oc:].T, ((0, k_pad - kdim), (0, oc_pad - oc)))
    wa = wa.astype(jnp.bfloat16)                                 # [Kp, OCp]
    wb = wb.astype(jnp.bfloat16)

    ba = jnp.pad(bias[:oc], (0, oc_pad - oc)).reshape(1, oc_pad)
    bb = jnp.pad(bias[oc:], (0, oc_pad - oc)).reshape(1, oc_pad)
    ba = ba.astype(jnp.float32)
    bb = bb.astype(jnp.float32)

    out_dtype = x.dtype
    out_itemsize = jnp.dtype(out_dtype).itemsize

    # VMEM budget (double-buffered inputs/outputs + f32 accumulators); keep a
    # safe ceiling so the same code also fits v7x's 64 MiB physical VMEM.
    vmem_bytes = (2 * tm * tk * 2              # patch block (bf16)
                  + 2 * 2 * tk * tn * 2        # Wa + Wb blocks (bf16)
                  + 2 * 2 * 8 * tn * 4         # bias blocks (f32, padded)
                  + 2 * tm * tn * out_itemsize # output block
                  + 2 * tm * tn * 4)           # accumulators
    vmem_limit = int(min(max(2 * vmem_bytes, 16 << 20), 48 << 20))

    grid = (m_pad // tm, oc_pad // tn, k_pad // tk)

    out_flat = pl.pallas_call(
        _glu_matmul_kernel,
        out_shape=jax.ShapeDtypeStruct((m_pad, oc_pad), out_dtype),
        grid_spec=pltpu.PrefetchScalarGridSpec(
            num_scalar_prefetch=0,
            grid=grid,
            in_specs=[
                pl.BlockSpec((tm, tk), lambda i, j, k: (i, k)),   # patches
                pl.BlockSpec((tk, tn), lambda i, j, k: (k, j)),   # Wa
                pl.BlockSpec((tk, tn), lambda i, j, k: (k, j)),   # Wb
                pl.BlockSpec((1, tn), lambda i, j, k: (0, j)),    # ba
                pl.BlockSpec((1, tn), lambda i, j, k: (0, j)),    # bb
            ],
            out_specs=pl.BlockSpec((tm, tn), lambda i, j, k: (i, j)),
            scratch_shapes=[
                pltpu.VMEM((tm, tn), jnp.float32),
                pltpu.VMEM((tm, tn), jnp.float32),
            ],
        ),
        compiler_params=pltpu.CompilerParams(
            dimension_semantics=("parallel", "parallel", "arbitrary"),
            vmem_limit_bytes=vmem_limit,
        ),
    )(patches, wa, wb, ba, bb)

    out = out_flat[:m, :oc].reshape(n, oh, ow, oc).transpose(0, 3, 1, 2)
    return out


# ------------------------------ reference --------------------------------- #
def glu2d_reference(x, weight, bias, *, stride=1, padding=0):
    y = lax.conv_general_dilated(
        x, weight,
        window_strides=(stride, stride),
        padding=[(padding, padding), (padding, padding)],
        dimension_numbers=("NCHW", "OIHW", "NCHW"),
    ) + bias.reshape(1, -1, 1, 1)
    oc = weight.shape[0] // 2
    a, g = y[:, :oc], y[:, oc:]
    return a * jax.nn.sigmoid(g)


# --------------------------------- main ------------------------------------ #
if __name__ == "__main__":
    key = jax.random.PRNGKey(0)
    k_x, k_w, k_b = jax.random.split(key, 3)

    # Glu2d(in_channels=4, out_channels=4, kernel_size=3, stride=1, padding=1)
    N, C, H, W = 2, 4, 16, 16
    OC, KH, KW = 4, 3, 3
    STRIDE, PAD = 1, 1

    x = jax.random.normal(k_x, (N, C, H, W), dtype=jnp.float32)
    fan_in = C * KH * KW
    weight = jax.random.uniform(
        k_w, (2 * OC, C, KH, KW), dtype=jnp.float32,
        minval=-1.0 / np.sqrt(fan_in), maxval=1.0 / np.sqrt(fan_in))
    bias = jax.random.uniform(
        k_b, (2 * OC,), dtype=jnp.float32,
        minval=-1.0 / np.sqrt(fan_in), maxval=1.0 / np.sqrt(fan_in))

    out = glu2d_forward(x, weight, bias, stride=STRIDE, padding=PAD)
    out = jax.block_until_ready(out)

    ref = glu2d_reference(x, weight, bias, stride=STRIDE, padding=PAD)
    ref = jax.block_until_ready(ref)

    assert out.shape == (N, OC, H, W), out.shape
    # bf16 MXU inputs -> loosen tolerance vs the f32 XLA conv reference.
    np.testing.assert_allclose(np.asarray(out), np.asarray(ref),
                               rtol=2e-2, atol=2e-2)
    print("KERNEL_OK")
</pallas_src>

<mosaic_0001>
module attributes {stable_mosaic.version = 11 : i64} {
  func.func @_glu_matmul_kernel(%arg0: i32, %arg1: i32, %arg2: i32, %arg3: memref<512x128xbf16, #tpu.memory_space<vmem>>, %arg4: memref<128x128xbf16, #tpu.memory_space<vmem>>, %arg5: memref<128x128xbf16, #tpu.memory_space<vmem>>, %arg6: memref<1x128xf32, #tpu.memory_space<vmem>>, %arg7: memref<1x128xf32, #tpu.memory_space<vmem>>, %arg8: memref<512x128xf32, #tpu.memory_space<vmem>>, %arg9: memref<512x128xf32, #tpu.memory_space<vmem>>, %arg10: memref<512x128xf32, #tpu.memory_space<vmem>>) attributes {dimension_semantics = [#tpu.dimension_semantics<parallel>, #tpu.dimension_semantics<parallel>, #tpu.dimension_semantics<arbitrary>], iteration_bounds = array<i64: 1, 1, 1>, scalar_prefetch = 0 : i64, scratch_operands = 2 : i64, tpu.core_type = #tpu.core_type<tc>, window_params = [{transform_indices = @transform_0, window_bounds = array<i64: 512, 128>}, {transform_indices = @transform_1, window_bounds = array<i64: 128, 128>}, {transform_indices = @transform_2, window_bounds = array<i64: 128, 128>}, {transform_indices = @transform_3, window_bounds = array<i64: 1, 128>}, {transform_indices = @transform_4, window_bounds = array<i64: 1, 128>}, {transform_indices = @transform_5, window_bounds = array<i64: 512, 128>}]} {
    %c0_i32 = arith.constant 0 : i32
    %0 = arith.cmpi eq, %arg2, %c0_i32 : i32
    %1 = arith.extui %0 : i1 to i32
    %c0_i32_0 = arith.constant 0 : i32
    %2 = arith.cmpi ne, %1, %c0_i32_0 : i32
    scf.if %2 {
      %cst_19 = arith.constant 0.000000e+00 : f32
      %18 = vector.broadcast %cst_19 : f32 to vector<512x128xf32>
      %c0_20 = arith.constant 0 : index
      %c0_21 = arith.constant 0 : index
      %19 = vector.load %arg9[%c0_20, %c0_21] : memref<512x128xf32, #tpu.memory_space<vmem>>, vector<512x128xf32>
      tpu.vector_store %arg9[%c0_20, %c0_21], %18 {strides = array<i32>} : memref<512x128xf32, #tpu.memory_space<vmem>>, vector<512x128xf32>,
      %cst_22 = arith.constant 0.000000e+00 : f32
      %20 = vector.broadcast %cst_22 : f32 to vector<512x128xf32>
      %c0_23 = arith.constant 0 : index
      %c0_24 = arith.constant 0 : index
      %21 = vector.load %arg10[%c0_23, %c0_24] : memref<512x128xf32, #tpu.memory_space<vmem>>, vector<512x128xf32>
      tpu.vector_store %arg10[%c0_23, %c0_24], %20 {strides = array<i32>} : memref<512x128xf32, #tpu.memory_space<vmem>>, vector<512x128xf32>,
    } else {
    }
    %c0 = arith.constant 0 : index
    %c0_1 = arith.constant 0 : index
    %3 = vector.load %arg9[%c0, %c0_1] : memref<512x128xf32, #tpu.memory_space<vmem>>, vector<512x128xf32>
    %c0_2 = arith.constant 0 : index
    %c0_3 = arith.constant 0 : index
    %4 = vector.load %arg3[%c0_2, %c0_3] : memref<512x128xbf16, #tpu.memory_space<vmem>>, vector<512x128xbf16>
    %c0_4 = arith.constant 0 : index
    %c0_5 = arith.constant 0 : index
    %5 = vector.load %arg4[%c0_4, %c0_5] : memref<128x128xbf16, #tpu.memory_space<vmem>>, vector<128x128xbf16>
    %cst = arith.constant dense<0.000000e+00> : vector<512x128xf32>
    %6 = tpu.matmul %4, %5, %cst {dimension_numbers = #tpu.dot_dimension_numbers<[1], [0], [0], [1], [0, 0, 1, 1], [], []>} : vector<512x128xbf16>, vector<128x128xbf16>, vector<512x128xf32> -> vector<512x128xf32>
    %7 = arith.addf %3, %6 : vector<512x128xf32>
    %c0_6 = arith.constant 0 : index
    %c0_7 = arith.constant 0 : index
    %8 = vector.load %arg9[%c0_6, %c0_7] : memref<512x128xf32, #tpu.memory_space<vmem>>, vector<512x128xf32>
    tpu.vector_store %arg9[%c0_6, %c0_7], %7 {strides = array<i32>} : memref<512x128xf32, #tpu.memory_space<vmem>>, vector<512x128xf32>,
    %c0_8 = arith.constant 0 : index
    %c0_9 = arith.constant 0 : index
    %9 = vector.load %arg10[%c0_8, %c0_9] : memref<512x128xf32, #tpu.memory_space<vmem>>, vector<512x128xf32>
    %c0_10 = arith.constant 0 : index
    %c0_11 = arith.constant 0 : index
    %10 = vector.load %arg3[%c0_10, %c0_11] : memref<512x128xbf16, #tpu.memory_space<vmem>>, vector<512x128xbf16>
    %c0_12 = arith.constant 0 : index
    %c0_13 = arith.constant 0 : index
    %11 = vector.load %arg5[%c0_12, %c0_13] : memref<128x128xbf16, #tpu.memory_space<vmem>>, vector<128x128xbf16>
    %cst_14 = arith.constant dense<0.000000e+00> : vector<512x128xf32>
    %12 = tpu.matmul %10, %11, %cst_14 {dimension_numbers = #tpu.dot_dimension_numbers<[1], [0], [0], [1], [0, 0, 1, 1], [], []>} : vector<512x128xbf16>, vector<128x128xbf16>, vector<512x128xf32> -> vector<512x128xf32>
    %13 = arith.addf %9, %12 : vector<512x128xf32>
    %c0_15 = arith.constant 0 : index
    %c0_16 = arith.constant 0 : index
    %14 = vector.load %arg10[%c0_15, %c0_16] : memref<512x128xf32, #tpu.memory_space<vmem>>, vector<512x128xf32>
    tpu.vector_store %arg10[%c0_15, %c0_16], %13 {strides = array<i32>} : memref<512x128xf32, #tpu.memory_space<vmem>>, vector<512x128xf32>,
    %c0_i32_17 = arith.constant 0 : i32
    %15 = arith.cmpi eq, %arg2, %c0_i32_17 : i32
    %16 = arith.extui %15 : i1 to i32
    %c0_i32_18 = arith.constant 0 : i32
    %17 = arith.cmpi ne, %16, %c0_i32_18 : i32
    scf.if %17 {
      %c0_19 = arith.constant 0 : index
      %c0_20 = arith.constant 0 : index
      %18 = vector.load %arg9[%c0_19, %c0_20] : memref<512x128xf32, #tpu.memory_space<vmem>>, vector<512x128xf32>
      %c0_21 = arith.constant 0 : index
      %c0_22 = arith.constant 0 : index
      %19 = vector.load %arg6[%c0_21, %c0_22] : memref<1x128xf32, #tpu.memory_space<vmem>>, vector<1x128xf32>
      %20 = vector.broadcast %19 : vector<1x128xf32> to vector<512x128xf32>
      %21 = arith.addf %18, %20 : vector<512x128xf32>
      %c0_23 = arith.constant 0 : index
      %c0_24 = arith.constant 0 : index
      %22 = vector.load %arg10[%c0_23, %c0_24] : memref<512x128xf32, #tpu.memory_space<vmem>>, vector<512x128xf32>
      %c0_25 = arith.constant 0 : index
      %c0_26 = arith.constant 0 : index
      %23 = vector.load %arg7[%c0_25, %c0_26] : memref<1x128xf32, #tpu.memory_space<vmem>>, vector<1x128xf32>
      %24 = vector.broadcast %23 : vector<1x128xf32> to vector<512x128xf32>
      %25 = arith.addf %22, %24 : vector<512x128xf32>
      %26 = arith.negf %25 : vector<512x128xf32>
      %27 = math.exp %26 : vector<512x128xf32>
      %cst_27 = arith.constant 1.000000e+00 : f32
      %28 = vector.broadcast %cst_27 : f32 to vector<512x128xf32>
      %29 = arith.addf %28, %27 : vector<512x128xf32>
      %30 = arith.divf %28, %29 : vector<512x128xf32>
      %31 = arith.mulf %21, %30 : vector<512x128xf32>
      %c0_28 = arith.constant 0 : index
      %c0_29 = arith.constant 0 : index
      %32 = vector.load %arg8[%c0_28, %c0_29] : memref<512x128xf32, #tpu.memory_space<vmem>>, vector<512x128xf32>
      tpu.vector_store %arg8[%c0_28, %c0_29], %31 {strides = array<i32>} : memref<512x128xf32, #tpu.memory_space<vmem>>, vector<512x128xf32>,
    } else {
    }
    return
  }
  func.func @transform_0(%arg0: i32, %arg1: i32, %arg2: i32) -> (i32, i32) {
    %c0_i32 = arith.constant 0 : i32
    return %arg0, %arg2 : i32, i32
  }
  func.func @transform_1(%arg0: i32, %arg1: i32, %arg2: i32) -> (i32, i32) {
    %c0_i32 = arith.constant 0 : i32
    return %arg2, %arg1 : i32, i32
  }
  func.func @transform_2(%arg0: i32, %arg1: i32, %arg2: i32) -> (i32, i32) {
    %c0_i32 = arith.constant 0 : i32
    return %arg2, %arg1 : i32, i32
  }
  func.func @transform_3(%arg0: i32, %arg1: i32, %arg2: i32) -> (i32, i32) {
    %c0_i32 = arith.constant 0 : i32
    %c0_i32_0 = arith.constant 0 : i32
    return %c0_i32, %arg1 : i32, i32
  }
  func.func @transform_4(%arg0: i32, %arg1: i32, %arg2: i32) -> (i32, i32) {
    %c0_i32 = arith.constant 0 : i32
    %c0_i32_0 = arith.constant 0 : i32
    return %c0_i32, %arg1 : i32, i32
  }
  func.func @transform_5(%arg0: i32, %arg1: i32, %arg2: i32) -> (i32, i32) {
    %c0_i32 = arith.constant 0 : i32
    return %arg0, %arg1 : i32, i32
  }
}

</mosaic_0001>

<bundles_post_ra>
// kernel: glu2d_forward.1
= control target key start
LH: loop header
LB: loop body
LE: loop exit
PB: predicated region body
PF: predicated region fallthrough
CT: control target
= control target key end

     0   :  { %s4046_s2 = inlined_call_operand.vmem [shape: bf16[128,128], index: 2, kind: input, shape index: {}]   ;;  %s4047_s1 = inlined_call_operand.vmem [shape: bf16[128,128], index: 1, kind: input, shape index: {}]   ;;  %s4048_s0 = inlined_call_operand.vmem [shape: bf16[512,128], index: 0, kind: input, shape index: {}]   ;;  %s4049_s4 = inlined_call_operand.vmem [shape: f32[1,128], index: 4, kind: input, shape index: {}]   ;;  %s4050_s3 = inlined_call_operand.vmem [shape: f32[1,128], index: 3, kind: input, shape index: {}]   ;;  %s4051_s5 = inlined_call_operand.vmem [shape: f32[512,128], index: 5, kind: output, shape index: {}]  }
   0x1   :  { %v2930_v0 = vld [vmem:[%s4046_s2 + $0x38] sm:$0xff]   ;;  %v2931_v1 = vld [vmem:[%s4046_s2 + $0x30] sm:$0xff]   ;;  %v2932_v2 = vld [vmem:[%s4046_s2 + $0x28] sm:$0xff]  }
   0x2   :  { %2850 = vmatprep.subr.bf16.mxu1 %v2930_v0  ;;  %v2937_v3 = vld [vmem:[%s4047_s1 + $0x38] sm:$0xff]   ;;  %v2933_v4 = vld [vmem:[%s4046_s2 + $0x20] sm:$0xff]   ;;  %v2939_v5 = vld [vmem:[%s4047_s1 + $0x30] sm:$0xff]  }
   0x3   :  { %2851 = vmatpush3.bf16.msra.mxu1 %v2930_v0  ;;  %2770 = vmatprep.subr.bf16.mxu0 %v2937_v3  ;;  %v2940_v6 = vld [vmem:[%s4048_s0] sm:$0xff]   ;;  %v2934_v7 = vld [vmem:[%s4046_s2 + $0x18] sm:$0xff]   ;;  %v2942_v8 = vld [vmem:[%s4047_s1 + $0x28] sm:$0xff]  }
   0x4   :  { %2852 = vmatprep.subr.bf16.mxu1 %v2931_v1  ;;  %2771 = vmatpush3.bf16.msra.mxu0 %v2937_v3  ;;  %v2943_v9 = vld [vmem:[%s4047_s1 + $0x20] sm:$0xff]   ;;  %v2935_v10 = vld [vmem:[%s4046_s2 + $0x10] sm:$0xff]   ;;  %v2946_v11 = vld [vmem:[%s4047_s1 + $0x18] sm:$0xff]  }
   0x5   :  { %2772 = vmatprep.subr.bf16.mxu0 %v2939_v5  ;;  %2866 = vmatprep.mubr.bf16.mxu1 %v2940_v6  ;;  %v2936_v12 = vld [vmem:[%s4046_s2 + $0x8] sm:$0xff]   ;;  %v2938_v13 = vld [vmem:[%s4046_s2] sm:$0xff]   ;;  %v2947_v14 = vld [vmem:[%s4047_s1 + $0x10] sm:$0xff]  }
   0x6   :  { %v2954_v15 = vld [vmem:[%s4048_s0] sm:$0xff]   ;;  %v2950_v16 = vld [vmem:[%s4047_s1 + $0x8] sm:$0xff]   ;;  %v2944_v18 = vld [vmem:[%s4048_s0 + $0x10] sm:$0xff]  }
   0x7   :  { %2853 = vmatpush3.bf16.msra.mxu1 %v2931_v1  ;;  %2786 = vmatprep.mubr.bf16.mxu0 %v2954_v15  ;;  %v2941_v17 = vld [vmem:[%s4048_s0 + $0x8] sm:$0xff]   ;;  %v2951_v19 = vld [vmem:[%s4047_s1] sm:$0xff]   ;;  %v2945_v20 = vld [vmem:[%s4048_s0 + $0x18] sm:$0xff]  }
   0x8   :  { %2854 = vmatprep.subr.bf16.mxu1 %v2932_v2  ;;  %2773 = vmatpush3.bf16.msra.mxu0 %v2939_v5  ;;  %v2955_v21 = vld [vmem:[%s4048_s0 + $0x8] sm:$0xff]   ;;  %v2958_v22 = vld [vmem:[%s4048_s0 + $0x10] sm:$0xff]   ;;  %v2948_v23 = vld [vmem:[%s4048_s0 + $0x20] sm:$0xff]  }
   0x9   :  { %2774 = vmatprep.subr.bf16.mxu0 %v2942_v8  ;;  %v2949_v24 = vld [vmem:[%s4048_s0 + $0x28] sm:$0xff]   ;;  %v2959_v25 = vld [vmem:[%s4048_s0 + $0x18] sm:$0xff]   ;;  %v2962_v26 = vld [vmem:[%s4048_s0 + $0x20] sm:$0xff]  }
   0xa   :  { %v2952_v27 = vld [vmem:[%s4048_s0 + $0x30] sm:$0xff]   ;;  %v2953_v28 = vld [vmem:[%s4048_s0 + $0x38] sm:$0xff]   ;;  %v2963_v29 = vld [vmem:[%s4048_s0 + $0x28] sm:$0xff]  }
   0xb   :  { %2855 = vmatpush3.bf16.msra.mxu1 %v2932_v2  ;;  %v2966_v30 = vld [vmem:[%s4048_s0 + $0x30] sm:$0xff]   ;;  %v2956_v31 = vld [vmem:[%s4048_s0 + $0x40] sm:$0xff]   ;;  %v2957_v32 = vld [vmem:[%s4048_s0 + $0x48] sm:$0xff]  }
   0xc   :  { %2856 = vmatprep.subr.bf16.mxu1 %v2933_v4  ;;  %2775 = vmatpush3.bf16.msra.mxu0 %v2942_v8  ;;  %v2967_v33 = vld [vmem:[%s4048_s0 + $0x38] sm:$0xff]   ;;  %v2970_v34 = vld [vmem:[%s4048_s0 + $0x40] sm:$0xff]   ;;  %v2960_v35 = vld [vmem:[%s4048_s0 + $0x50] sm:$0xff]  }
   0xd   :  { %2776 = vmatprep.subr.bf16.mxu0 %v2943_v9  ;;  %v2961_v36 = vld [vmem:[%s4048_s0 + $0x58] sm:$0xff]   ;;  %v2971_v37 = vld [vmem:[%s4048_s0 + $0x48] sm:$0xff]   ;;  %v2974_v38 = vld [vmem:[%s4048_s0 + $0x50] sm:$0xff]  }
   0xe   :  { %v2964_v39 = vld [vmem:[%s4048_s0 + $0x60] sm:$0xff]   ;;  %v2965_v40 = vld [vmem:[%s4048_s0 + $0x68] sm:$0xff]   ;;  %v2975_v41 = vld [vmem:[%s4048_s0 + $0x58] sm:$0xff]  }
   0xf   :  { %2857 = vmatpush3.bf16.msra.mxu1 %v2933_v4  ;;  %v2978_v42 = vld [vmem:[%s4048_s0 + $0x60] sm:$0xff]   ;;  %v2968_v43 = vld [vmem:[%s4048_s0 + $0x70] sm:$0xff]   ;;  %v2979_v44 = vld [vmem:[%s4048_s0 + $0x68] sm:$0xff]  }
  0x10   :  { %2858 = vmatprep.subr.bf16.mxu1 %v2934_v7  ;;  %2777 = vmatpush3.bf16.msra.mxu0 %v2943_v9  ;;  %v2969_v45 = vld [vmem:[%s4048_s0 + $0x78] sm:$0xff]   ;;  %v2982_v46 = vld [vmem:[%s4048_s0 + $0x70] sm:$0xff]   ;;  %v2972_v47 = vld [vmem:[%s4048_s0 + $0x80] sm:$0xff]  }
  0x11   :  { %2778 = vmatprep.subr.bf16.mxu0 %v2946_v11  ;;  %v2983_v48 = vld [vmem:[%s4048_s0 + $0x78] sm:$0xff]   ;;  %v2973_v49 = vld [vmem:[%s4048_s0 + $0x88] sm:$0xff]   ;;  %v2986_v50 = vld [vmem:[%s4048_s0 + $0x80] sm:$0xff]  }
  0x12   :  { %v2976_v51 = vld [vmem:[%s4048_s0 + $0x90] sm:$0xff]   ;;  %v2987_v52 = vld [vmem:[%s4048_s0 + $0x88] sm:$0xff]   ;;  %v2977_v53 = vld [vmem:[%s4048_s0 + $0x98] sm:$0xff]  }
  0x13   :  { %2859 = vmatpush3.bf16.msra.mxu1 %v2934_v7  ;;  %v2990_v54 = vld [vmem:[%s4048_s0 + $0x90] sm:$0xff]   ;;  %v2980_v55 = vld [vmem:[%s4048_s0 + $0xa0] sm:$0xff]   ;;  %v2991_v56 = vld [vmem:[%s4048_s0 + $0x98] sm:$0xff]  }
  0x14   :  { %2860 = vmatprep.subr.bf16.mxu1 %v2935_v10  ;;  %2779 = vmatpush3.bf16.msra.mxu0 %v2946_v11  ;;  %v2981_v57 = vld [vmem:[%s4048_s0 + $0xa8] sm:$0xff]   ;;  %v2994_v58 = vld [vmem:[%s4048_s0 + $0xa0] sm:$0xff]   ;;  %v2984_v59 = vld [vmem:[%s4048_s0 + $0xb0] sm:$0xff]  }
  0x15   :  { %2780 = vmatprep.subr.bf16.mxu0 %v2947_v14  ;;  %v2995_v60 = vld [vmem:[%s4048_s0 + $0xa8] sm:$0xff]   ;;  %v2985_v61 = vld [vmem:[%s4048_s0 + $0xb8] sm:$0xff]   ;;  %v2998_v62 = vld [vmem:[%s4048_s0 + $0xb0] sm:$0xff]  }
  0x16   :  { %v2988_v63 = vld [vmem:[%s4048_s0 + $0xc0] sm:$0xff]   ;;  %v2999_v0 = vld [vmem:[%s4048_s0 + $0xb8] sm:$0xff]   ;;  %v2989_v1 = vld [vmem:[%s4048_s0 + $0xc8] sm:$0xff]  }
  0x17   :  { %2861 = vmatpush3.bf16.msra.mxu1 %v2935_v10  ;;  %v3002_v2 = vld [vmem:[%s4048_s0 + $0xc0] sm:$0xff]   ;;  %v2992_v3 = vld [vmem:[%s4048_s0 + $0xd0] sm:$0xff]   ;;  %v3003_v4 = vld [vmem:[%s4048_s0 + $0xc8] sm:$0xff]  }
  0x18   :  { %2862 = vmatprep.subr.bf16.mxu1 %v2936_v12  ;;  %2781 = vmatpush3.bf16.msra.mxu0 %v2947_v14  ;;  %v2993_v5 = vld [vmem:[%s4048_s0 + $0xd8] sm:$0xff]   ;;  %v3004_v6 = vld [vmem:[%s4048_s0 + $0xd0] sm:$0xff]   ;;  %v2996_v7 = vld [vmem:[%s4048_s0 + $0xe0] sm:$0xff]  }
  0x19   :  { %2782 = vmatprep.subr.bf16.mxu0 %v2950_v16  ;;  %v3005_v8 = vld [vmem:[%s4048_s0 + $0xd8] sm:$0xff]   ;;  %v2997_v9 = vld [vmem:[%s4048_s0 + $0xe8] sm:$0xff]   ;;  %v3006_v10 = vld [vmem:[%s4048_s0 + $0xe0] sm:$0xff]  }
  0x1a   :  { %v3000_v11 = vld [vmem:[%s4048_s0 + $0xf0] sm:$0xff]   ;;  %v3009_v15 = vld [vmem:[%s4048_s0 + $0xf8] sm:$0xff]  }
  0x1b   :  { %2863 = vmatpush3.bf16.msra.mxu1 %v2936_v12  ;;  %v3007_v12 = vld [vmem:[%s4048_s0 + $0xe8] sm:$0xff]   ;;  %v3008_v14 = vld [vmem:[%s4048_s0 + $0xf0] sm:$0xff]  }
  0x1c   :  { %2864 = vmatprep.subr.bf16.mxu1 %v2938_v13  ;;  %2783 = vmatpush3.bf16.msra.mxu0 %v2950_v16  ;;  %v3541_v16 = vld [vmem:[%s4049_s4] ss:$0 sm:$0xff] }
  0x1d   :  { %2784 = vmatprep.subr.bf16.mxu0 %v2951_v19 }
  0x1f   :  { %2865 = vmatpush3.bf16.msra.mxu1 %v2938_v13  ;;  %v3001_v13 = vld [vmem:[%s4048_s0 + $0xf8] sm:$0xff]  }
  0x20   :  { %2785 = vmatpush3.bf16.msra.mxu0 %v2951_v19 }
  0x22   :  { %2867 = vmatmul.mubr.bf16.vlgmr.msra.gmra.mxu1 %v2941_v17 }
  0x23   :  { %2870 = vmatprep.mubr.bf16.mxu1 %v2944_v18  ;;  %2787 = vmatmul.mubr.bf16.vlgmr.msra.gmra.mxu0 %v2955_v21 }
  0x24   :  { %2790 = vmatprep.mubr.bf16.mxu0 %v2958_v22 }
  0x2a   :  { %2871 = vmatmul.mubr.bf16.gmra.mxu1 %v2945_v20 }
  0x2b   :  { %2874 = vmatprep.mubr.bf16.mxu1 %v2948_v23  ;;  %2791 = vmatmul.mubr.bf16.gmra.mxu0 %v2959_v25 }
  0x2c   :  { %2794 = vmatprep.mubr.bf16.mxu0 %v2962_v26 }
  0x32   :  { %2875 = vmatmul.mubr.bf16.gmra.mxu1 %v2949_v24 }
  0x33   :  { %2878 = vmatprep.mubr.bf16.mxu1 %v2952_v27  ;;  %2795 = vmatmul.mubr.bf16.gmra.mxu0 %v2963_v29 }
  0x34   :  { %2798 = vmatprep.mubr.bf16.mxu0 %v2966_v30 }
  0x3a   :  { %2879 = vmatmul.mubr.bf16.gmra.mxu1 %v2953_v28 }
  0x3b   :  { %2882 = vmatprep.mubr.bf16.mxu1 %v2956_v31  ;;  %2799 = vmatmul.mubr.bf16.gmra.mxu0 %v2967_v33 }
  0x3c   :  { %2802 = vmatprep.mubr.bf16.mxu0 %v2970_v34 }
  0x42   :  { %2883 = vmatmul.mubr.bf16.gmra.mxu1 %v2957_v32 }
  0x43   :  { %2886 = vmatprep.mubr.bf16.mxu1 %v2960_v35  ;;  %2803 = vmatmul.mubr.bf16.gmra.mxu0 %v2971_v37 }
  0x44   :  { %2806 = vmatprep.mubr.bf16.mxu0 %v2974_v38 }
  0x4a   :  { %2887 = vmatmul.mubr.bf16.gmra.mxu1 %v2961_v36 }
  0x4b   :  { %2890 = vmatprep.mubr.bf16.mxu1 %v2964_v39  ;;  %2807 = vmatmul.mubr.bf16.gmra.mxu0 %v2975_v41 }
  0x4c   :  { %2810 = vmatprep.mubr.bf16.mxu0 %v2978_v42 }
  0x52   :  { %2891 = vmatmul.mubr.bf16.gmra.mxu1 %v2965_v40 }
  0x53   :  { %2894 = vmatprep.mubr.bf16.mxu1 %v2968_v43  ;;  %2811 = vmatmul.mubr.bf16.gmra.mxu0 %v2979_v44 }
  0x54   :  { %2814 = vmatprep.mubr.bf16.mxu0 %v2982_v46 }
  0x5a   :  { %2895 = vmatmul.mubr.bf16.gmra.mxu1 %v2969_v45 }
  0x5b   :  { %2898 = vmatprep.mubr.bf16.mxu1 %v2972_v47  ;;  %2815 = vmatmul.mubr.bf16.gmra.mxu0 %v2983_v48 }
  0x5c   :  { %2818 = vmatprep.mubr.bf16.mxu0 %v2986_v50 }
  0x62   :  { %2899 = vmatmul.mubr.bf16.gmra.mxu1 %v2973_v49 }
  0x63   :  { %2902 = vmatprep.mubr.bf16.mxu1 %v2976_v51  ;;  %2819 = vmatmul.mubr.bf16.gmra.mxu0 %v2987_v52 }
  0x64   :  { %2822 = vmatprep.mubr.bf16.mxu0 %v2990_v54 }
  0x6a   :  { %2903 = vmatmul.mubr.bf16.gmra.mxu1 %v2977_v53 }
  0x6b   :  { %2906 = vmatprep.mubr.bf16.mxu1 %v2980_v55  ;;  %2823 = vmatmul.mubr.bf16.gmra.mxu0 %v2991_v56 }
  0x6c   :  { %2826 = vmatprep.mubr.bf16.mxu0 %v2994_v58 }
  0x72   :  { %2907 = vmatmul.mubr.bf16.gmra.mxu1 %v2981_v57 }
  0x73   :  { %2910 = vmatprep.mubr.bf16.mxu1 %v2984_v59  ;;  %2827 = vmatmul.mubr.bf16.gmra.mxu0 %v2995_v60 }
  0x74   :  { %2830 = vmatprep.mubr.bf16.mxu0 %v2998_v62 }
  0x7a   :  { %2911 = vmatmul.mubr.bf16.gmra.mxu1 %v2985_v61 }
  0x7b   :  { %2914 = vmatprep.mubr.bf16.mxu1 %v2988_v63  ;;  %2831 = vmatmul.mubr.bf16.gmra.mxu0 %v2999_v0 }
  0x7c   :  { %2834 = vmatprep.mubr.bf16.mxu0 %v3002_v2 }
  0x82   :  { %2915 = vmatmul.mubr.bf16.gmra.mxu1 %v2989_v1 }
  0x83   :  { %2918 = vmatprep.mubr.bf16.mxu1 %v2992_v3  ;;  %2835 = vmatmul.mubr.bf16.gmra.mxu0 %v3003_v4 }
  0x84   :  { %2838 = vmatprep.mubr.bf16.mxu0 %v3004_v6 }
  0x8a   :  { %2919 = vmatmul.mubr.bf16.gmra.mxu1 %v2993_v5 }
  0x8b   :  { %2922 = vmatprep.mubr.bf16.mxu1 %v2996_v7  ;;  %2839 = vmatmul.mubr.bf16.gmra.mxu0 %v3005_v8 }
  0x8c   :  { %2842 = vmatprep.mubr.bf16.mxu0 %v3006_v10 }
  0x92   :  { %2923 = vmatmul.mubr.bf16.gmra.mxu1 %v2997_v9 }
  0x93   :  { %2926 = vmatprep.mubr.bf16.mxu1 %v3000_v11  ;;  %2843 = vmatmul.mubr.bf16.gmra.mxu0 %v3007_v12 }
  0x94   :  { %2846 = vmatprep.mubr.bf16.mxu0 %v3008_v14 }
  0x9a   :  { %2927 = vmatmul.mubr.bf16.gmra.mxu1 %v3001_v13  ;;  %v3579_v13 = vld [vmem:[%s4050_s3] ss:$0 sm:$0xff] }
  0x9b   :  { %2847 = vmatmul.mubr.bf16.gmra.mxu0 %v3009_v15 }
  0xe2   :  { %v2868_v17 = vpop.f32.mrf.mxu1 }
  0xe3   :  { %v1966_v18 = vadd.f32 %v2868_v17, %v3541_v16  ;;  %v3547_v28 = vpop.f32.mrf.mxu0 }
  0xe4   :  { %v1372_v19 = vpop.f32.mrf.mxu1 }
  0xe5   :  { %v2628_v20 = vmul.f32 -1.442695, %v1966_v18  ;;  %v1964_v21 = vadd.f32 %v3541_v16, %v1372_v19  ;;  %v3550_v32 = vpop.f32.mrf.mxu0 }
  0xe6   :  { %v2869_v22 = vpop.f32.mrf.mxu1 }
  0xe7   :  { %3010 = vpow2.f32 %v2628_v20  ;;  %v2626_v23 = vmul.f32 -1.442695, %v1964_v21  ;;  %v1967_v24 = vadd.f32 %v2869_v22, %v3541_v16  ;;  %v3553_v36 = vpop.f32.mrf.mxu0 }
  0xe8   :  { %v1375_v25 = vpop.f32.mrf.mxu1 }
  0xe9   :  { %3012 = vpow2.f32 %v2626_v23  ;;  %v2629_v26 = vmul.f32 -1.442695, %v1967_v24  ;;  %v1965_v27 = vadd.f32 %v3541_v16, %v1375_v25  ;;  %v3556_v40 = vpop.f32.mrf.mxu0  ;;  %v1831_v24 = vadd.f32 %v3547_v28, %v3579_v13 }
  0xea   :  { %v2872_v29 = vpop.f32.mrf.mxu1  ;;  %v1829_v28 = vadd.f32 %v3579_v13, %v3550_v32 }
  0xeb   :  { %3014 = vpow2.f32 %v2629_v26  ;;  %v2627_v30 = vmul.f32 -1.442695, %v1965_v27  ;;  %v1970_v31 = vadd.f32 %v2872_v29, %v3541_v16  ;;  %v3559_v44 = vpop.f32.mrf.mxu0 }
  0xec   :  { %v1388_v33 = vpop.f32.mrf.mxu1 }
  0xed   :  { %3016 = vpow2.f32 %v2627_v30  ;;  %v2632_v34 = vmul.f32 -1.442695, %v1970_v31  ;;  %v1968_v35 = vadd.f32 %v3541_v16, %v1388_v33  ;;  %v3562_v48 = vpop.f32.mrf.mxu0 }
  0xee   :  { %v2873_v37 = vpop.f32.mrf.mxu1 }
  0xef   :  { %3018 = vpow2.f32 %v2632_v34  ;;  %v2630_v38 = vmul.f32 -1.442695, %v1968_v35  ;;  %v1971_v39 = vadd.f32 %v2873_v37, %v3541_v16  ;;  %v3565_v54 = vpop.f32.mrf.mxu0 }
  0xf0   :  { %v1391_v41 = vpop.f32.mrf.mxu1 }
  0xf1   :  { %3020 = vpow2.f32 %v2630_v38  ;;  %v2633_v42 = vmul.f32 -1.442695, %v1971_v39  ;;  %v1969_v43 = vadd.f32 %v3541_v16, %v1391_v41  ;;  %v3568_v60 = vpop.f32.mrf.mxu0 }
  0xf2   :  { %v2876_v45 = vpop.f32.mrf.mxu1 }
  0xf3   :  { %3022 = vpow2.f32 %v2633_v42  ;;  %v2631_v46 = vmul.f32 -1.442695, %v1969_v43  ;;  %v1974_v47 = vadd.f32 %v2876_v45, %v3541_v16  ;;  %v3571_v2 = vpop.f32.mrf.mxu0 }
  0xf4   :  { %v3011_v49 = vpop.eup %3010  ;;  %v1404_v50 = vpop.f32.mrf.mxu1 }
  0xf5   :  { %v2222_v51 = vadd.f32 1.0, %v3011_v49  ;;  %3024 = vpow2.f32 %v2631_v46  ;;  %v2636_v52 = vmul.f32 -1.442695, %v1974_v47  ;;  %v1972_v53 = vadd.f32 %v3541_v16, %v1404_v50  ;;  %v3574_v8 = vpop.f32.mrf.mxu0 }
  0xf6   :  { %v3013_v55 = vpop.eup %3012  ;;  %v2877_v56 = vpop.f32.mrf.mxu1 }
  0xf7   :  { %3026 = vrcp.f32 %v2222_v51  ;;  %v2220_v57 = vadd.f32 1.0, %v3013_v55  ;;  %v2634_v58 = vmul.f32 -1.442695, %v1972_v53  ;;  %v1975_v59 = vadd.f32 %v2877_v56, %v3541_v16  ;;  %v3582_v15 = vpop.f32.mrf.mxu0 }
  0xf8   :  { %v3015_v61 = vpop.eup %3014  ;;  %3028 = vpow2.f32 %v2636_v52  ;;  %v1407_v62 = vpop.f32.mrf.mxu1  ;;  %v1832_v51 = vadd.f32 %v3553_v36, %v3579_v13  ;;  %v1830_v36 = vadd.f32 %v3579_v13, %v3556_v40 }
  0xf9   :  { %3030 = vrcp.f32 %v2220_v57  ;;  %v2223_v63 = vadd.f32 1.0, %v3015_v61  ;;  %v2637_v0 = vmul.f32 -1.442695, %v1975_v59  ;;  %v1973_v1 = vadd.f32 %v3541_v16, %v1407_v62  ;;  %v3585_v22 = vpop.f32.mrf.mxu0 }
  0xfa   :  { %v3017_v3 = vpop.eup %3016  ;;  %3032 = vpow2.f32 %v2634_v58  ;;  %v2880_v4 = vpop.f32.mrf.mxu1  ;;  %v1835_v61 = vadd.f32 %v3559_v44, %v3579_v13 }
  0xfb   :  { %3034 = vrcp.f32 %v2223_v63  ;;  %v2221_v5 = vadd.f32 1.0, %v3017_v3  ;;  %v2635_v6 = vmul.f32 -1.442695, %v1973_v1  ;;  %v1978_v7 = vadd.f32 %v2880_v4, %v3541_v16  ;;  %v3590_v30 = vpop.f32.mrf.mxu0 }
  0xfc   :  { %v3019_v9 = vpop.eup %3018  ;;  %3036 = vpow2.f32 %v2637_v0  ;;  %v1420_v10 = vpop.f32.mrf.mxu1 }
  0xfd   :  { %3038 = vrcp.f32 %v2221_v5  ;;  %v2226_v11 = vadd.f32 1.0, %v3019_v9  ;;  %v2640_v12 = vmul.f32 -1.442695, %v1978_v7  ;;  %v1976_v14 = vadd.f32 %v3541_v16, %v1420_v10  ;;  %v3593_v38 = vpop.f32.mrf.mxu0 }
  0xfe   :  { %v3021_v17 = vpop.eup %3020  ;;  %3040 = vpow2.f32 %v2635_v6  ;;  %v2881_v18 = vpop.f32.mrf.mxu1 }
  0xff   :  { %3042 = vrcp.f32 %v2226_v11  ;;  %v2224_v19 = vadd.f32 1.0, %v3021_v17  ;;  %v2638_v20 = vmul.f32 -1.442695, %v1976_v14  ;;  %v1979_v21 = vadd.f32 %v2881_v18, %v3541_v16  ;;  %v3598_v47 = vpop.f32.mrf.mxu0 }
 0x100   :  { %v3023_v23 = vpop.eup %3022  ;;  %3044 = vpow2.f32 %v2640_v12  ;;  %v1423_v25 = vpop.f32.mrf.mxu1  ;;  %v1833_v17 = vadd.f32 %v3579_v13, %v3562_v48 }
 0x101   :  { %3046 = vrcp.f32 %v2224_v19  ;;  %v2227_v26 = vadd.f32 1.0, %v3023_v23  ;;  %v2641_v27 = vmul.f32 -1.442695, %v1979_v21  ;;  %v1977_v29 = vadd.f32 %v3541_v16, %v1423_v25  ;;  %v3606_v57 = vpop.f32.mrf.mxu0 }
 0x102   :  { %v3025_v31 = vpop.eup %3024  ;;  %3048 = vpow2.f32 %v2638_v20  ;;  %v2884_v33 = vpop.f32.mrf.mxu1 }
 0x103   :  { %3050 = vrcp.f32 %v2227_v26  ;;  %v2225_v34 = vadd.f32 1.0, %v3025_v31  ;;  %v2639_v35 = vmul.f32 -1.442695, %v1977_v29  ;;  %v1982_v37 = vadd.f32 %v2884_v33, %v3541_v16  ;;  %v3616_v4 = vpop.f32.mrf.mxu0 }
 0x104   :  { %v3027_v39 = vpop.eup %3026  ;;  %3052 = vpow2.f32 %v2641_v27  ;;  %v1436_v41 = vpop.f32.mrf.mxu1  ;;  %v1836_v27 = vadd.f32 %v3565_v54, %v3579_v13 }
 0x105   :  { %v3029_v42 = vpop.eup %3028  ;;  %3054 = vrcp.f32 %v2225_v34  ;;  %v2414_v43 = vmul.f32 %v3027_v39, %v1831_v24  ;;  %v2644_v45 = vmul.f32 -1.442695, %v1982_v37  ;;  %v1980_v46 = vadd.f32 %v3541_v16, %v1436_v41  ;;  %v3622_v11 = vpop.f32.mrf.mxu0 }
 0x106   :  { %v3031_v49 = vpop.eup %3030  ;;  %v2230_v50 = vadd.f32 1.0, %v3029_v42  ;;  %3056 = vpow2.f32 %v2639_v35  ;;  %v2885_v52 = vpop.f32.mrf.mxu1 }
 0x107   :  { %v3033_v53 = vpop.eup %3032  ;;  %2478 = vst [vmem:[%s4051_s5 + $0x10] sm:$0xff] %v2414_v43  ;;  %v2412_v32 = vmul.f32 %v3031_v49, %v1829_v28  ;;  %3058 = vpow2.f32 %v2644_v45  ;;  %v2642_v55 = vmul.f32 -1.442695, %v1980_v46  ;;  %v1983_v56 = vadd.f32 %v2885_v52, %v3541_v16  ;;  %v3630_v24 = vpop.f32.mrf.mxu0 }
 0x108   :  { %v3035_v58 = vpop.eup %3034  ;;  %3060 = vrcp.f32 %v2230_v50  ;;  %v2228_v59 = vadd.f32 1.0, %v3033_v53  ;;  %v1439_v62 = vpop.f32.mrf.mxu1  ;;  %v1834_v28 = vadd.f32 %v3579_v13, %v3568_v60 }
 0x109   :  { %v3037_v63 = vpop.eup %3036  ;;  %2476 = vst [vmem:[%s4051_s5] sm:$0xff] %v2412_v32  ;;  %v2415_v0 = vmul.f32 %v3035_v58, %v1832_v51  ;;  %3062 = vpow2.f32 %v2642_v55  ;;  %v2645_v1 = vmul.f32 -1.442695, %v1983_v56  ;;  %v1981_v3 = vadd.f32 %v3541_v16, %v1439_v62  ;;  %v3638_v35 = vpop.f32.mrf.mxu0 }
 0x10a   :  { %v3039_v5 = vpop.eup %3038  ;;  %3064 = vrcp.f32 %v2228_v59  ;;  %v2231_v6 = vadd.f32 1.0, %v3037_v63  ;;  %v2888_v40 = vpop.f32.mrf.mxu1  ;;  %v1839_v51 = vadd.f32 %v3571_v2, %v3579_v13 }
 0x10b   :  { %v3041_v7 = vpop.eup %3040  ;;  %2479 = vst [vmem:[%s4051_s5 + $0x18] sm:$0xff] %v2415_v0  ;;  %v2413_v44 = vmul.f32 %v3039_v5, %v1830_v36  ;;  %3066 = vpow2.f32 %v2645_v1  ;;  %v2643_v9 = vmul.f32 -1.442695, %v1981_v3  ;;  %v1986_v10 = vadd.f32 %v2888_v40, %v3541_v16  ;;  %v3646_v46 = vpop.f32.mrf.mxu0 }
 0x10c   :  { %v3043_v12 = vpop.eup %3042  ;;  %3068 = vrcp.f32 %v2231_v6  ;;  %v2229_v14 = vadd.f32 1.0, %v3041_v7  ;;  %v1452_v18 = vpop.f32.mrf.mxu1  ;;  %v1837_v5 = vadd.f32 %v3579_v13, %v3574_v8 }
 0x10d   :  { %v3045_v19 = vpop.eup %3044  ;;  %2477 = vst [vmem:[%s4051_s5 + $0x8] sm:$0xff] %v2413_v44  ;;  %v2418_v20 = vmul.f32 %v3043_v12, %v1835_v61  ;;  %3070 = vpow2.f32 %v2643_v9  ;;  %v2648_v21 = vmul.f32 -1.442695, %v1986_v10  ;;  %v1984_v23 = vadd.f32 %v3541_v16, %v1452_v18  ;;  %v3654_v56 = vpop.f32.mrf.mxu0 }
 0x10e   :  { %v3047_v25 = vpop.eup %3046  ;;  %3072 = vrcp.f32 %v2229_v14  ;;  %v2234_v26 = vadd.f32 1.0, %v3045_v19  ;;  %v2889_v48 = vpop.f32.mrf.mxu1 }
 0x10f   :  { %v3049_v29 = vpop.eup %3048  ;;  %2482 = vst [vmem:[%s4051_s5 + $0x30] sm:$0xff] %v2418_v20  ;;  %v2416_v31 = vmul.f32 %v3047_v25, %v1833_v17  ;;  %3074 = vpow2.f32 %v2648_v21  ;;  %v2646_v33 = vmul.f32 -1.442695, %v1984_v23  ;;  %v1987_v34 = vadd.f32 %v2889_v48, %v3541_v16  ;;  %v3660_v0 = vpop.f32.mrf.mxu0 }
 0x110   :  { %v3051_v37 = vpop.eup %3050  ;;  %3076 = vrcp.f32 %v2234_v26  ;;  %v2232_v39 = vadd.f32 1.0, %v3049_v29  ;;  %v1455_v54 = vpop.f32.mrf.mxu1  ;;  %v1840_v17 = vadd.f32 %v3582_v15, %v3579_v13  ;;  %v1843_v15 = vadd.f32 %v3590_v30, %v3579_v13 }
 0x111   :  { %v3053_v41 = vpop.eup %3052  ;;  %2480 = vst [vmem:[%s4051_s5 + $0x20] sm:$0xff] %v2416_v31  ;;  %v2419_v42 = vmul.f32 %v3051_v37, %v1836_v27  ;;  %3078 = vpow2.f32 %v2646_v33  ;;  %v2649_v43 = vmul.f32 -1.442695, %v1987_v34  ;;  %v1985_v45 = vadd.f32 %v3541_v16, %v1455_v54  ;;  %v3665_v10 = vpop.f32.mrf.mxu0 }
 0x112   :  { %v3055_v49 = vpop.eup %3054  ;;  %3080 = vrcp.f32 %v2232_v39  ;;  %v2235_v50 = vadd.f32 1.0, %v3053_v41  ;;  %v2892_v60 = vpop.f32.mrf.mxu1  ;;  %v1838_v27 = vadd.f32 %v3579_v13, %v3585_v22 }
 0x113   :  { %v3057_v52 = vpop.eup %3056  ;;  %2483 = vst [vmem:[%s4051_s5 + $0x38] sm:$0xff] %v2419_v42  ;;  %v2417_v53 = vmul.f32 %v3055_v49, %v1834_v28  ;;  %3082 = vpow2.f32 %v2649_v43  ;;  %v2647_v32 = vmul.f32 -1.442695, %v1985_v45  ;;  %v1990_v55 = vadd.f32 %v2892_v60, %v3541_v16  ;;  %v3673_v23 = vpop.f32.mrf.mxu0 }
 0x114   :  { %v3059_v58 = vpop.eup %3058  ;;  %3084 = vrcp.f32 %v2235_v50  ;;  %v2233_v59 = vadd.f32 1.0, %v3057_v52  ;;  %v1468_v36 = vpop.f32.mrf.mxu1  ;;  %v1841_v50 = vadd.f32 %v3579_v13, %v3593_v38  ;;  %v1847_v38 = vadd.f32 %v3616_v4, %v3579_v13 }
 0x115   :  { %v3061_v61 = vpop.eup %3060  ;;  %v2238_v62 = vadd.f32 1.0, %v3059_v58  ;;  %2481 = vst [vmem:[%s4051_s5 + $0x28] sm:$0xff] %v2417_v53  ;;  %3086 = vpow2.f32 %v2647_v32  ;;  %v2652_v2 = vmul.f32 -1.442695, %v1990_v55  ;;  %v1988_v63 = vadd.f32 %v3541_v16, %v1468_v36  ;;  %v3683_v37 = vpop.f32.mrf.mxu0 }
 0x116   :  { %v3063_v1 = vpop.eup %3062  ;;  %3088 = vrcp.f32 %v2233_v59  ;;  %v2422_v3 = vmul.f32 %v3061_v61, %v1839_v51  ;;  %v2893_v6 = vpop.f32.mrf.mxu1  ;;  %v1844_v36 = vadd.f32 %v3598_v47, %v3579_v13  ;;  %v1842_v47 = vadd.f32 %v3579_v13, %v3606_v57 }
 0x117   :  { %v3065_v40 = vpop.eup %3064  ;;  %3090 = vrcp.f32 %v2238_v62  ;;  %v2236_v7 = vadd.f32 1.0, %v3063_v1  ;;  %v2650_v44 = vmul.f32 -1.442695, %v1988_v63  ;;  %v1991_v9 = vadd.f32 %v2893_v6, %v3541_v16  ;;  %v3689_v43 = vpop.f32.mrf.mxu0 }
 0x118   :  { %v3067_v12 = vpop.eup %3066  ;;  %2486 = vst [vmem:[%s4051_s5 + $0x50] sm:$0xff] %v2422_v3  ;;  %v2420_v14 = vmul.f32 %v3065_v40, %v1837_v5  ;;  %3092 = vpow2.f32 %v2652_v2  ;;  %v1471_v8 = vpop.f32.mrf.mxu1 }
 0x119   :  { %v3069_v18 = vpop.eup %3068  ;;  %3094 = vrcp.f32 %v2236_v7  ;;  %v2239_v19 = vadd.f32 1.0, %v3067_v12  ;;  %v2653_v20 = vmul.f32 -1.442695, %v1991_v9  ;;  %v1989_v21 = vadd.f32 %v3541_v16, %v1471_v8  ;;  %v3697_v55 = vpop.f32.mrf.mxu0 }
 0x11a   :  { %v3071_v25 = vpop.eup %3070  ;;  %2484 = vst [vmem:[%s4051_s5 + $0x40] sm:$0xff] %v2420_v14  ;;  %v2423_v26 = vmul.f32 %v3069_v18, %v1840_v17  ;;  %3096 = vpow2.f32 %v2650_v44  ;;  %v2896_v48 = vpop.f32.mrf.mxu1  ;;  %v1845_v8 = vadd.f32 %v3579_v13, %v3622_v11 }
 0x11b   :  { %v3073_v29 = vpop.eup %3072  ;;  %3098 = vrcp.f32 %v2239_v19  ;;  %v2237_v31 = vadd.f32 1.0, %v3071_v25  ;;  %v2651_v33 = vmul.f32 -1.442695, %v1989_v21  ;;  %v1994_v34 = vadd.f32 %v2896_v48, %v3541_v16  ;;  %v3707_v3 = vpop.f32.mrf.mxu0 }
 0x11c   :  { %v3075_v39 = vpop.eup %3074  ;;  %2487 = vst [vmem:[%s4051_s5 + $0x58] sm:$0xff] %v2423_v26  ;;  %v2421_v28 = vmul.f32 %v3073_v29, %v1838_v27  ;;  %3100 = vpow2.f32 %v2653_v20  ;;  %v1484_v22 = vpop.f32.mrf.mxu1 }
 0x11d   :  { %v3077_v54 = vpop.eup %3076  ;;  %3102 = vrcp.f32 %v2237_v31  ;;  %v2242_v30 = vadd.f32 1.0, %v3075_v39  ;;  %v2656_v41 = vmul.f32 -1.442695, %v1994_v34  ;;  %v1992_v42 = vadd.f32 %v3541_v16, %v1484_v22  ;;  %v3715_v12 = vpop.f32.mrf.mxu0 }
 0x11e   :  { %v3079_v45 = vpop.eup %3078  ;;  %2485 = vst [vmem:[%s4051_s5 + $0x48] sm:$0xff] %v2421_v28  ;;  %v2426_v49 = vmul.f32 %v3077_v54, %v1843_v15  ;;  %3104 = vpow2.f32 %v2651_v33  ;;  %v2897_v51 = vpop.f32.mrf.mxu1  ;;  %v1848_v15 = vadd.f32 %v3630_v24, %v3579_v13  ;;  %v1846_v24 = vadd.f32 %v3579_v13, %v3638_v35 }
 0x11f   :  { %v3081_v60 = vpop.eup %3080  ;;  %3106 = vrcp.f32 %v2242_v30  ;;  %v2240_v52 = vadd.f32 1.0, %v3079_v45  ;;  %v2654_v53 = vmul.f32 -1.442695, %v1992_v42  ;;  %v1995_v32 = vadd.f32 %v2897_v51, %v3541_v16  ;;  %v3723_v25 = vpop.f32.mrf.mxu0 }
 0x120   :  { %v3083_v58 = vpop.eup %3082  ;;  %2490 = vst [vmem:[%s4051_s5 + $0x70] sm:$0xff] %v2426_v49  ;;  %v2424_v59 = vmul.f32 %v3081_v60, %v1841_v50  ;;  %3108 = vpow2.f32 %v2656_v41  ;;  %v1487_v61 = vpop.f32.mrf.mxu1  ;;  %v1851_v22 = vadd.f32 %v3646_v46, %v3579_v13 }
 0x121   :  { %v3085_v62 = vpop.eup %3084  ;;  %3110 = vrcp.f32 %v2240_v52  ;;  %v2243_v2 = vadd.f32 1.0, %v3083_v58  ;;  %v2657_v63 = vmul.f32 -1.442695, %v1995_v32  ;;  %v1993_v1 = vadd.f32 %v3541_v16, %v1487_v61  ;;  %v3734_v34 = vpop.f32.mrf.mxu0 }
 0x122   :  { %v3087_v5 = vpop.eup %3086  ;;  %2488 = vst [vmem:[%s4051_s5 + $0x60] sm:$0xff] %v2424_v59  ;;  %v2427_v6 = vmul.f32 %v3085_v62, %v1844_v36  ;;  %3112 = vpow2.f32 %v2654_v53  ;;  %v2900_v4 = vpop.f32.mrf.mxu1  ;;  %v1849_v36 = vadd.f32 %v3579_v13, %v3654_v56 }
 0x123   :  { %v3089_v40 = vpop.eup %3088  ;;  %3114 = vrcp.f32 %v2243_v2  ;;  %v2241_v7 = vadd.f32 1.0, %v3087_v5  ;;  %v2655_v44 = vmul.f32 -1.442695, %v1993_v1  ;;  %v1998_v9 = vadd.f32 %v2900_v4, %v3541_v16  ;;  %v3744_v49 = vpop.f32.mrf.mxu0 }
 0x124   :  { %v3091_v14 = vpop.eup %3090  ;;  %2491 = vst [vmem:[%s4051_s5 + $0x78] sm:$0xff] %v2427_v6  ;;  %v2425_v17 = vmul.f32 %v3089_v40, %v1842_v47  ;;  %3116 = vpow2.f32 %v2657_v63  ;;  %v1500_v57 = vpop.f32.mrf.mxu1  ;;  %v1852_v47 = vadd.f32 %v3660_v0, %v3579_v13 }
 0x125   :  { %v3093_v18 = vpop.eup %3092  ;;  %3118 = vrcp.f32 %v2241_v7  ;;  %v2430_v19 = vmul.f32 %v3091_v14, %v1847_v38  ;;  %v2660_v20 = vmul.f32 -1.442695, %v1998_v9  ;;  %v1996_v21 = vadd.f32 %v3541_v16, %v1500_v57  ;;  %v3750_v32 = vpop.f32.mrf.mxu0 }
 0x126   :  { %v3095_v26 = vpop.eup %3094  ;;  %v2246_v27 = vadd.f32 1.0, %v3093_v18  ;;  %2489 = vst [vmem:[%s4051_s5 + $0x68] sm:$0xff] %v2425_v17  ;;  %3120 = vpow2.f32 %v2655_v44  ;;  %v2901_v11 = vpop.f32.mrf.mxu1 }
 0x127   :  { %v3097_v48 = vpop.eup %3096  ;;  %2494 = vst [vmem:[%s4051_s5 + $0x90] sm:$0xff] %v2430_v19  ;;  %v2428_v29 = vmul.f32 %v3095_v26, %v1845_v8  ;;  %3122 = vpow2.f32 %v2660_v20  ;;  %v2658_v31 = vmul.f32 -1.442695, %v1996_v21  ;;  %v1999_v33 = vadd.f32 %v2901_v11, %v3541_v16  ;;  %v3758_v1 = vpop.f32.mrf.mxu0 }
 0x128   :  { %v3099_v39 = vpop.eup %3098  ;;  %3124 = vrcp.f32 %v2246_v27  ;;  %v2244_v28 = vadd.f32 1.0, %v3097_v48  ;;  %v1503_v54 = vpop.f32.mrf.mxu1  ;;  %v1850_v8 = vadd.f32 %v3579_v13, %v3665_v10 }
 0x129   :  { %v3101_v30 = vpop.eup %3100  ;;  %2492 = vst [vmem:[%s4051_s5 + $0x80] sm:$0xff] %v2428_v29  ;;  %v2431_v41 = vmul.f32 %v3099_v39, %v1848_v15  ;;  %3126 = vpow2.f32 %v2658_v31  ;;  %v2661_v42 = vmul.f32 -1.442695, %v1999_v33  ;;  %v1997_v45 = vadd.f32 %v3541_v16, %v1503_v54  ;;  %v3766_v9 = vpop.f32.mrf.mxu0 }
 0x12a   :  { %v3103_v50 = vpop.eup %3102  ;;  %3128 = vrcp.f32 %v2244_v28  ;;  %v2247_v51 = vadd.f32 1.0, %v3101_v30  ;;  %v2904_v35 = vpop.f32.mrf.mxu1  ;;  %v1855_v15 = vadd.f32 %v3673_v23, %v3579_v13 }
 0x12b   :  { %v3105_v60 = vpop.eup %3104  ;;  %2495 = vst [vmem:[%s4051_s5 + $0x98] sm:$0xff] %v2431_v41  ;;  %v2429_v46 = vmul.f32 %v3103_v50, %v1846_v24  ;;  %3130 = vpow2.f32 %v2661_v42  ;;  %v2659_v52 = vmul.f32 -1.442695, %v1997_v45  ;;  %v2002_v53 = vadd.f32 %v2904_v35, %v3541_v16  ;;  %v3774_v21 = vpop.f32.mrf.mxu0 }
 0x12c   :  { %v3107_v58 = vpop.eup %3106  ;;  %3132 = vrcp.f32 %v2247_v51  ;;  %v2245_v59 = vadd.f32 1.0, %v3105_v60  ;;  %v1516_v38 = vpop.f32.mrf.mxu1  ;;  %v1853_v50 = vadd.f32 %v3579_v13, %v3683_v37 }
 0x12d   :  { %v3109_v61 = vpop.eup %3108  ;;  %2493 = vst [vmem:[%s4051_s5 + $0x88] sm:$0xff] %v2429_v46  ;;  %v2434_v62 = vmul.f32 %v3107_v58, %v1851_v22  ;;  %3134 = vpow2.f32 %v2659_v52  ;;  %v2664_v2 = vmul.f32 -1.442695, %v2002_v53  ;;  %v2000_v63 = vadd.f32 %v3541_v16, %v1516_v38  ;;  %v3782_v33 = vpop.f32.mrf.mxu0 }
 0x12e   :  { %v3111_v5 = vpop.eup %3110  ;;  %3136 = vrcp.f32 %v2245_v59  ;;  %v2250_v6 = vadd.f32 1.0, %v3109_v61  ;;  %v2905_v56 = vpop.f32.mrf.mxu1 }
 0x12f   :  { %v3113_v4 = vpop.eup %3112  ;;  %2498 = vst [vmem:[%s4051_s5 + $0xb0] sm:$0xff] %v2434_v62  ;;  %v2432_v40 = vmul.f32 %v3111_v5, %v1849_v36  ;;  %3138 = vpow2.f32 %v2664_v2  ;;  %v2662_v7 = vmul.f32 -1.442695, %v2000_v63  ;;  %v2003_v44 = vadd.f32 %v2905_v56, %v3541_v16  ;;  %v3788_v41 = vpop.f32.mrf.mxu0 }
 0x130   :  { %v3115_v14 = vpop.eup %3114  ;;  %3140 = vrcp.f32 %v2250_v6  ;;  %v2248_v17 = vadd.f32 1.0, %v3113_v4  ;;  %v1519_v0 = vpop.f32.mrf.mxu1  ;;  %v1856_v36 = vadd.f32 %v3689_v43, %v3579_v13  ;;  %v1859_v43 = vadd.f32 %v3707_v3, %v3579_v13 }
 0x131   :  { %v3117_v57 = vpop.eup %3116  ;;  %2496 = vst [vmem:[%s4051_s5 + $0xa0] sm:$0xff] %v2432_v40  ;;  %v2435_v18 = vmul.f32 %v3115_v14, %v1852_v47  ;;  %3142 = vpow2.f32 %v2662_v7  ;;  %v2665_v19 = vmul.f32 -1.442695, %v2003_v44  ;;  %v2001_v20 = vadd.f32 %v3541_v16, %v1519_v0  ;;  %v3793_v53 = vpop.f32.mrf.mxu0 }
 0x132   :  { %v3119_v26 = vpop.eup %3118  ;;  %3144 = vrcp.f32 %v2248_v17  ;;  %v2251_v27 = vadd.f32 1.0, %v3117_v57  ;;  %v2908_v10 = vpop.f32.mrf.mxu1  ;;  %v1854_v47 = vadd.f32 %v3579_v13, %v3697_v55 }
 0x133   :  { %v3121_v11 = vpop.eup %3120  ;;  %2499 = vst [vmem:[%s4051_s5 + $0xb8] sm:$0xff] %v2435_v18  ;;  %v2433_v48 = vmul.f32 %v3119_v26, %v1850_v8  ;;  %3146 = vpow2.f32 %v2665_v19  ;;  %v2663_v29 = vmul.f32 -1.442695, %v2001_v20  ;;  %v2006_v31 = vadd.f32 %v2908_v10, %v3541_v16  ;;  %v3801_v63 = vpop.f32.mrf.mxu0 }
 0x134   :  { %v3123_v39 = vpop.eup %3122  ;;  %3148 = vrcp.f32 %v2251_v27  ;;  %v2249_v28 = vadd.f32 1.0, %v3121_v11  ;;  %v1532_v24 = vpop.f32.mrf.mxu1  ;;  %v1857_v27 = vadd.f32 %v3579_v13, %v3715_v12  ;;  %v1863_v12 = vadd.f32 %v3744_v49, %v3579_v13 }
 0x135   :  { %v3125_v22 = vpop.eup %3124  ;;  %v2254_v54 = vadd.f32 1.0, %v3123_v39  ;;  %2497 = vst [vmem:[%s4051_s5 + $0xa8] sm:$0xff] %v2433_v48  ;;  %3150 = vpow2.f32 %v2663_v29  ;;  %v2668_v23 = vmul.f32 -1.442695, %v2006_v31  ;;  %v2004_v30 = vadd.f32 %v3541_v16, %v1532_v24  ;;  %v3811_v14 = vpop.f32.mrf.mxu0 }
 0x136   :  { %v3127_v42 = vpop.eup %3126  ;;  %3152 = vrcp.f32 %v2249_v28  ;;  %v2438_v45 = vmul.f32 %v3125_v22, %v1855_v15  ;;  %v2909_v51 = vpop.f32.mrf.mxu1  ;;  %v1860_v24 = vadd.f32 %v3723_v25, %v3579_v13  ;;  %v1858_v25 = vadd.f32 %v3579_v13, %v3734_v34 }
 0x137   :  { %v3129_v35 = vpop.eup %3128  ;;  %3154 = vrcp.f32 %v2254_v54  ;;  %v2252_v60 = vadd.f32 1.0, %v3127_v42  ;;  %v2666_v46 = vmul.f32 -1.442695, %v2004_v30  ;;  %v2007_v52 = vadd.f32 %v2909_v51, %v3541_v16  ;;  %v3817_v19 = vpop.f32.mrf.mxu0 }
 0x138   :  { %v3131_v58 = vpop.eup %3130  ;;  %2502 = vst [vmem:[%s4051_s5 + $0xd0] sm:$0xff] %v2438_v45  ;;  %v2436_v59 = vmul.f32 %v3129_v35, %v1853_v50  ;;  %3156 = vpow2.f32 %v2668_v23  ;;  %v1535_v37 = vpop.f32.mrf.mxu1 }
 0x139   :  { %v3133_v38 = vpop.eup %3132  ;;  %3158 = vrcp.f32 %v2252_v60  ;;  %v2255_v61 = vadd.f32 1.0, %v3131_v58  ;;  %v2669_v62 = vmul.f32 -1.442695, %v2007_v52  ;;  %v2005_v2 = vadd.f32 %v3541_v16, %v1535_v37  ;;  %v3825_v31 = vpop.f32.mrf.mxu0 }
 0x13a   :  { %v3135_v5 = vpop.eup %3134  ;;  %2500 = vst [vmem:[%s4051_s5 + $0xc0] sm:$0xff] %v2436_v59  ;;  %v2439_v6 = vmul.f32 %v3133_v38, %v1856_v36  ;;  %3160 = vpow2.f32 %v2666_v46  ;;  %v2912_v56 = vpop.f32.mrf.mxu1  ;;  %v1861_v37 = vadd.f32 %v3579_v13, %v3750_v32 }
 0x13b   :  { %v3137_v4 = vpop.eup %3136  ;;  %3162 = vrcp.f32 %v2255_v61  ;;  %v2253_v40 = vadd.f32 1.0, %v3135_v5  ;;  %v2667_v7 = vmul.f32 -1.442695, %v2005_v2  ;;  %v2010_v44 = vadd.f32 %v2912_v56, %v3541_v16  ;;  %v3835_v45 = vpop.f32.mrf.mxu0 }
 0x13c   :  { %v3139_v17 = vpop.eup %3138  ;;  %2503 = vst [vmem:[%s4051_s5 + $0xd8] sm:$0xff] %v2439_v6  ;;  %v2437_v8 = vmul.f32 %v3137_v4, %v1854_v47  ;;  %3164 = vpow2.f32 %v2669_v62  ;;  %v1548_v55 = vpop.f32.mrf.mxu1 }
 0x13d   :  { %v3141_v0 = vpop.eup %3140  ;;  %3166 = vrcp.f32 %v2253_v40  ;;  %v2258_v3 = vadd.f32 1.0, %v3139_v17  ;;  %v2672_v57 = vmul.f32 -1.442695, %v2010_v44  ;;  %v2008_v18 = vadd.f32 %v3541_v16, %v1548_v55  ;;  %v3843_v58 = vpop.f32.mrf.mxu0 }
 0x13e   :  { %v3143_v20 = vpop.eup %3142  ;;  %2501 = vst [vmem:[%s4051_s5 + $0xc8] sm:$0xff] %v2437_v8  ;;  %v2442_v26 = vmul.f32 %v3141_v0, %v1859_v43  ;;  %3168 = vpow2.f32 %v2667_v7  ;;  %v2913_v15 = vpop.f32.mrf.mxu1  ;;  %v1864_v43 = vadd.f32 %v3758_v1, %v3579_v13  ;;  %v1862_v1 = vadd.f32 %v3579_v13, %v3766_v9 }
 0x13f   :  { %v3145_v10 = vpop.eup %3144  ;;  %3170 = vrcp.f32 %v2258_v3  ;;  %v2256_v11 = vadd.f32 1.0, %v3143_v20  ;;  %v2670_v48 = vmul.f32 -1.442695, %v2008_v18  ;;  %v2011_v29 = vadd.f32 %v2913_v15, %v3541_v16  ;;  %v3851_v5 = vpop.f32.mrf.mxu0  ;;  %v3874_v18 = vld [vmem:[%s4049_s4] ss:$0 sm:$0xff] }
 0x140   :  { %v3147_v39 = vpop.eup %3146  ;;  %2506 = vst [vmem:[%s4051_s5 + $0xf0] sm:$0xff] %v2442_v26  ;;  %v2440_v28 = vmul.f32 %v3145_v10, %v1857_v27  ;;  %3172 = vpow2.f32 %v2672_v57  ;;  %v1551_v22 = vpop.f32.mrf.mxu1  ;;  %v1867_v55 = vadd.f32 %v3774_v21, %v3579_v13 }
 0x141   :  { %v3149_v54 = vpop.eup %3148  ;;  %3174 = vrcp.f32 %v2256_v11  ;;  %v2259_v23 = vadd.f32 1.0, %v3147_v39  ;;  %v2673_v30 = vmul.f32 -1.442695, %v2011_v29  ;;  %v2009_v42 = vadd.f32 %v3541_v16, %v1551_v22  ;;  %v3862_v44 = vpop.f32.mrf.mxu0 }
 0x142   :  { %v3151_v50 = vpop.eup %3150  ;;  %2504 = vst [vmem:[%s4051_s5 + $0xe0] sm:$0xff] %v2440_v28  ;;  %v2443_v51 = vmul.f32 %v3149_v54, %v1860_v24  ;;  %3176 = vpow2.f32 %v2670_v48  ;;  %v2916_v49 = vpop.f32.mrf.mxu1  ;;  %v1865_v24 = vadd.f32 %v3579_v13, %v3782_v33 }
 0x143   :  { %v3153_v35 = vpop.eup %3152  ;;  %3178 = vrcp.f32 %v2259_v23  ;;  %v2257_v60 = vadd.f32 1.0, %v3151_v50  ;;  %v2671_v46 = vmul.f32 -1.442695, %v2009_v42  ;;  %v2014_v52 = vadd.f32 %v2916_v49, %v3541_v16  ;;  %v3877_v9 = vpop.f32.mrf.mxu0 }
 0x144   :  { %v3155_v59 = vpop.eup %3154  ;;  %2507 = vst [vmem:[%s4051_s5 + $0xf8] sm:$0xff] %v2443_v51  ;;  %v2441_v36 = vmul.f32 %v3153_v35, %v1858_v25  ;;  %3180 = vpow2.f32 %v2673_v30  ;;  %v1564_v34 = vpop.f32.mrf.mxu1  ;;  %v1868_v25 = vadd.f32 %v3788_v41, %v3579_v13 }
 0x145   :  { %v3157_v38 = vpop.eup %3156  ;;  %3182 = vrcp.f32 %v2257_v60  ;;  %v2446_v61 = vmul.f32 %v3155_v59, %v1863_v12  ;;  %v2676_v62 = vmul.f32 -1.442695, %v2014_v52  ;;  %v2012_v2 = vadd.f32 %v3541_v16, %v1564_v34  ;;  %v3883_v29 = vpop.f32.mrf.mxu0 }
 0x146   :  { %v3159_v6 = vpop.eup %3158  ;;  %v2262_v47 = vadd.f32 1.0, %v3157_v38  ;;  %2505 = vst [vmem:[%s4051_s5 + $0xe8] sm:$0xff] %v2441_v36  ;;  %3184 = vpow2.f32 %v2671_v46  ;;  %v2917_v32 = vpop.f32.mrf.mxu1 }
 0x147   :  { %v3161_v56 = vpop.eup %3160  ;;  %2510 = vst [vmem:[%s4051_s5 + $0x110] sm:$0xff] %v2446_v61  ;;  %v2444_v4 = vmul.f32 %v3159_v6, %v1861_v37  ;;  %3186 = vpow2.f32 %v2676_v62  ;;  %v2674_v40 = vmul.f32 -1.442695, %v2012_v2  ;;  %v2015_v7 = vadd.f32 %v2917_v32, %v3541_v16  ;;  %v3891_v42 = vpop.f32.mrf.mxu0 }
 0x148   :  { %v3163_v17 = vpop.eup %3162  ;;  %3188 = vrcp.f32 %v2262_v47  ;;  %v2260_v8 = vadd.f32 1.0, %v3161_v56  ;;  %v1567_v0 = vpop.f32.mrf.mxu1  ;;  %v1866_v37 = vadd.f32 %v3579_v13, %v3793_v53  ;;  %v1871_v47 = vadd.f32 %v3801_v63, %v3579_v13 }
 0x149   :  { %v3165_v3 = vpop.eup %3164  ;;  %2508 = vst [vmem:[%s4051_s5 + $0x100] sm:$0xff] %v2444_v4  ;;  %v2447_v57 = vmul.f32 %v3163_v17, %v1864_v43  ;;  %3190 = vpow2.f32 %v2674_v40  ;;  %v2677_v16 = vmul.f32 -1.442695, %v2015_v7  ;;  %v2013_v20 = vadd.f32 %v3874_v18, %v1567_v0  ;;  %v3899_v52 = vpop.f32.mrf.mxu0 }
 0x14a   :  { %v3167_v26 = vpop.eup %3166  ;;  %3192 = vrcp.f32 %v2260_v8  ;;  %v2263_v21 = vadd.f32 1.0, %v3165_v3  ;;  %v2920_v27 = vpop.f32.mrf.mxu1 }
 0x14b   :  { %v3169_v15 = vpop.eup %3168  ;;  %2511 = vst [vmem:[%s4051_s5 + $0x118] sm:$0xff] %v2447_v57  ;;  %v2445_v10 = vmul.f32 %v3167_v26, %v1862_v1  ;;  %3194 = vpow2.f32 %v2677_v16  ;;  %v2675_v11 = vmul.f32 -1.442695, %v2013_v20  ;;  %v2018_v48 = vadd.f32 %v3874_v18, %v2920_v27  ;;  %v3913_v40 = vpop.f32.mrf.mxu0  ;;  %v3922_v57 = vld [vmem:[%s4050_s3] ss:$0 sm:$0xff] }
 0x14c   :  { %v3171_v39 = vpop.eup %3170  ;;  %3196 = vrcp.f32 %v2263_v21  ;;  %v2261_v28 = vadd.f32 1.0, %v3169_v15  ;;  %v1580_v12 = vpop.f32.mrf.mxu1  ;;  %v1869_v16 = vadd.f32 %v3922_v57, %v3811_v14 }
 0x14d   :  { %v3173_v22 = vpop.eup %3172  ;;  %2509 = vst [vmem:[%s4051_s5 + $0x108] sm:$0xff] %v2445_v10  ;;  %v2450_v54 = vmul.f32 %v3171_v39, %v1867_v55  ;;  %3198 = vpow2.f32 %v2675_v11  ;;  %v2680_v23 = vmul.f32 -1.442695, %v2018_v48  ;;  %v2016_v30 = vadd.f32 %v3874_v18, %v1580_v12  ;;  %v3927_v10 = vpop.f32.mrf.mxu0 }
 0x14e   :  { %v3175_v50 = vpop.eup %3174  ;;  %3200 = vrcp.f32 %v2261_v28  ;;  %v2266_v51 = vadd.f32 1.0, %v3173_v22  ;;  %v2921_v33 = vpop.f32.mrf.mxu1  ;;  %v1872_v39 = vadd.f32 %v3922_v57, %v3817_v19  ;;  %v1875_v19 = vadd.f32 %v3922_v57, %v3835_v45 }
 0x14f   :  { %v3177_v49 = vpop.eup %3176  ;;  %2514 = vst [vmem:[%s4051_s5 + $0x130] sm:$0xff] %v2450_v54  ;;  %v2448_v35 = vmul.f32 %v3175_v50, %v1865_v24  ;;  %3202 = vpow2.f32 %v2680_v23  ;;  %v2678_v60 = vmul.f32 -1.442695, %v2016_v30  ;;  %v2019_v46 = vadd.f32 %v3874_v18, %v2921_v33 }
 0x150   :  { %v3179_v59 = vpop.eup %3178  ;;  %3204 = vrcp.f32 %v2266_v51  ;;  %v2264_v36 = vadd.f32 1.0, %v3177_v49  ;;  %v1583_v41 = vpop.f32.mrf.mxu1  ;;  %v1870_v30 = vadd.f32 %v3922_v57, %v3825_v31 }
 0x151   :  { %v3181_v34 = vpop.eup %3180  ;;  %2512 = vst [vmem:[%s4051_s5 + $0x120] sm:$0xff] %v2448_v35  ;;  %v2451_v38 = vmul.f32 %v3179_v59, %v1868_v25  ;;  %3206 = vpow2.f32 %v2678_v60  ;;  %v2681_v61 = vmul.f32 -1.442695, %v2019_v46  ;;  %v2017_v62 = vadd.f32 %v3874_v18, %v1583_v41  ;;  %v3943_v35 = vpop.f32.mrf.mxu0 }
 0x152   :  { %v3183_v2 = vpop.eup %3182  ;;  %3208 = vrcp.f32 %v2264_v36  ;;  %v2267_v6 = vadd.f32 1.0, %v3181_v34  ;;  %v2924_v43 = vpop.f32.mrf.mxu1 }
 0x153   :  { %v3185_v32 = vpop.eup %3184  ;;  %2515 = vst [vmem:[%s4051_s5 + $0x138] sm:$0xff] %v2451_v38  ;;  %v2449_v53 = vmul.f32 %v3183_v2, %v1866_v37  ;;  %3210 = vpow2.f32 %v2681_v61  ;;  %v2679_v56 = vmul.f32 -1.442695, %v2017_v62  ;;  %v2022_v4 = vadd.f32 %v3874_v18, %v2924_v43  ;;  %v3955_v43 = vpop.f32.mrf.mxu0 }
 0x154   :  { %v3187_v7 = vpop.eup %3186  ;;  %3212 = vrcp.f32 %v2267_v6  ;;  %v2265_v17 = vadd.f32 1.0, %v3185_v32  ;;  %v1596_v8 = vpop.f32.mrf.mxu1  ;;  %v1873_v38 = vadd.f32 %v3922_v57, %v3843_v58  ;;  %v1879_v58 = vadd.f32 %v3922_v57, %v3877_v9 }
 0x155   :  { %v3189_v1 = vpop.eup %3188  ;;  %v2270_v55 = vadd.f32 1.0, %v3187_v7  ;;  %2513 = vst [vmem:[%s4051_s5 + $0x128] sm:$0xff] %v2449_v53  ;;  %3214 = vpow2.f32 %v2679_v56  ;;  %v2684_v13 = vmul.f32 -1.442695, %v2022_v4  ;;  %v2020_v63 = vadd.f32 %v3874_v18, %v1596_v8 }
 0x156   :  { %v3191_v0 = vpop.eup %3190  ;;  %3216 = vrcp.f32 %v2265_v17  ;;  %v2454_v3 = vmul.f32 %v3189_v1, %v1871_v47  ;;  %v2925_v20 = vpop.f32.mrf.mxu1  ;;  %v1876_v56 = vadd.f32 %v3922_v57, %v3851_v5  ;;  %v1874_v5 = vadd.f32 %v3922_v57, %v3862_v44 }
 0x157   :  { %v3193_v26 = vpop.eup %3192  ;;  %3218 = vrcp.f32 %v2270_v55  ;;  %v2268_v21 = vadd.f32 1.0, %v3191_v0  ;;  %v2682_v27 = vmul.f32 -1.442695, %v2020_v63  ;;  %v2023_v15 = vadd.f32 %v3874_v18, %v2925_v20 }
 0x158   :  { %v3195_v11 = vpop.eup %3194  ;;  %2518 = vst [vmem:[%s4051_s5 + $0x150] sm:$0xff] %v2454_v3  ;;  %v2452_v48 = vmul.f32 %v3193_v26, %v1869_v16  ;;  %3220 = vpow2.f32 %v2684_v13  ;;  %v1599_v14 = vpop.f32.mrf.mxu1 }
 0x159   :  { %v3197_v28 = vpop.eup %3196  ;;  %3222 = vrcp.f32 %v2268_v21  ;;  %v2271_v24 = vadd.f32 1.0, %v3195_v11  ;;  %v2685_v12 = vmul.f32 -1.442695, %v2023_v15  ;;  %v2021_v22 = vadd.f32 %v3874_v18, %v1599_v14  ;;  %v2844_v3 = vpop.f32.mrf.mxu0 }
 0x15a   :  { %v3199_v54 = vpop.eup %3198  ;;  %2516 = vst [vmem:[%s4051_s5 + $0x140] sm:$0xff] %v2452_v48  ;;  %v2455_v23 = vmul.f32 %v3197_v28, %v1872_v39  ;;  %3224 = vpow2.f32 %v2682_v27  ;;  %v2928_v50 = vpop.f32.mrf.mxu1  ;;  %v1877_v21 = vadd.f32 %v3922_v57, %v3883_v29  ;;  %v1880_v48 = vadd.f32 %v3922_v57, %v3891_v42 }
 0x15b   :  { %v3201_v51 = vpop.eup %3200  ;;  %3226 = vrcp.f32 %v2271_v24  ;;  %v2269_v25 = vadd.f32 1.0, %v3199_v54  ;;  %v2683_v33 = vmul.f32 -1.442695, %v2021_v22  ;;  %v2026_v49 = vadd.f32 %v3874_v18, %v2928_v50  ;;  %v795_v39 = vpop.f32.mrf.mxu0 }
 0x15c   :  { %v3203_v60 = vpop.eup %3202  ;;  %2519 = vst [vmem:[%s4051_s5 + $0x158] sm:$0xff] %v2455_v23  ;;  %v2453_v46 = vmul.f32 %v3201_v51, %v1870_v30  ;;  %3228 = vpow2.f32 %v2685_v12  ;;  %v1612_v31 = vpop.f32.mrf.mxu1  ;;  %v1878_v12 = vadd.f32 %v3922_v57, %v3899_v52  ;;  %v1883_v22 = vadd.f32 %v3922_v57, %v3913_v40 }
 0x15d   :  { %v3205_v59 = vpop.eup %3204  ;;  %3230 = vrcp.f32 %v2269_v25  ;;  %v2274_v45 = vadd.f32 1.0, %v3203_v60  ;;  %v2688_v36 = vmul.f32 -1.442695, %v2026_v49  ;;  %v2024_v37 = vadd.f32 %v3874_v18, %v1612_v31 }
 0x15e   :  { %v3207_v41 = vpop.eup %3206  ;;  %2517 = vst [vmem:[%s4051_s5 + $0x148] sm:$0xff] %v2453_v46  ;;  %v2458_v34 = vmul.f32 %v3205_v59, %v1875_v19  ;;  %3232 = vpow2.f32 %v2683_v33  ;;  %v2929_v61 = vpop.f32.mrf.mxu1  ;;  %v1881_v40 = vadd.f32 %v3922_v57, %v3927_v10  ;;  %v1884_v31 = vadd.f32 %v3922_v57, %v3943_v35 }
 0x15f   :  { %v3209_v62 = vpop.eup %3208  ;;  %3234 = vrcp.f32 %v2274_v45  ;;  %v2272_v2 = vadd.f32 1.0, %v3207_v41  ;;  %v2686_v6 = vmul.f32 -1.442695, %v2024_v37  ;;  %v2027_v47 = vadd.f32 %v3874_v18, %v2929_v61  ;;  %v2845_v19 = vpop.f32.mrf.mxu0 }
 0x160   :  { %v3211_v32 = vpop.eup %3210  ;;  %2522 = vst [vmem:[%s4051_s5 + $0x170] sm:$0xff] %v2458_v34  ;;  %v2456_v53 = vmul.f32 %v3209_v62, %v1873_v38  ;;  %3236 = vpow2.f32 %v2688_v36  ;;  %v1615_v4 = vpop.f32.mrf.mxu1  ;;  %v1882_v41 = vadd.f32 %v3922_v57, %v3955_v43  ;;  %v1887_v61 = vadd.f32 %v3922_v57, %v2844_v3 }
 0x161   :  { %v3213_v7 = vpop.eup %3212  ;;  %3238 = vrcp.f32 %v2272_v2  ;;  %v2275_v17 = vadd.f32 1.0, %v3211_v32  ;;  %v2689_v8 = vmul.f32 -1.442695, %v2027_v47  ;;  %v2025_v1 = vadd.f32 %v3874_v18, %v1615_v4  ;;  %v798_v59 = vpop.f32.mrf.mxu0 }
 0x162   :  { %v3215_v55 = vpop.eup %3214  ;;  %2520 = vst [vmem:[%s4051_s5 + $0x160] sm:$0xff] %v2456_v53  ;;  %v2459_v13 = vmul.f32 %v3213_v7, %v1876_v56  ;;  %3240 = vpow2.f32 %v2686_v6  ;;  %v1885_v32 = vadd.f32 %v3922_v57, %v795_v39  ;;  %v1888_v4 = vadd.f32 %v3922_v57, %v2845_v19 }
 0x163   :  { %v3217_v63 = vpop.eup %3216  ;;  %3242 = vrcp.f32 %v2275_v17  ;;  %v2273_v9 = vadd.f32 1.0, %v3215_v55  ;;  %v2687_v0 = vmul.f32 -1.442695, %v2025_v1  ;;  %v2848_v2 = vpop.f32.mrf.mxu0 }
 0x164   :  { %v3219_v16 = vpop.eup %3218  ;;  %2523 = vst [vmem:[%s4051_s5 + $0x178] sm:$0xff] %v2459_v13  ;;  %v2457_v18 = vmul.f32 %v3217_v63, %v1874_v5  ;;  %3244 = vpow2.f32 %v2689_v8  ;;  %v1886_v8 = vadd.f32 %v3922_v57, %v798_v59  ;;  %v1891_v1 = vadd.f32 %v3922_v57, %v2848_v2 }
 0x165   :  { %v3221_v20 = vpop.eup %3220  ;;  %3246 = vrcp.f32 %v2273_v9  ;;  %v2462_v26 = vmul.f32 %v3219_v16, %v1879_v58  ;;  %v811_v56 = vpop.f32.mrf.mxu0 }
 0x166   :  { %v3223_v44 = vpop.eup %3222  ;;  %v2278_v27 = vadd.f32 1.0, %v3221_v20  ;;  %2521 = vst [vmem:[%s4051_s5 + $0x168] sm:$0xff] %v2457_v18  ;;  %3248 = vpow2.f32 %v2687_v0  ;;  %v1889_v0 = vadd.f32 %v3922_v57, %v811_v56 }
 0x167   :  { %v3225_v15 = vpop.eup %3224  ;;  %2526 = vst [vmem:[%s4051_s5 + $0x190] sm:$0xff] %v2462_v26  ;;  %v2460_v11 = vmul.f32 %v3223_v44, %v1877_v21  ;;  %v2849_v13 = vpop.f32.mrf.mxu0 }
 0x168   :  { %v3227_v14 = vpop.eup %3226  ;;  %3250 = vrcp.f32 %v2278_v27  ;;  %v2276_v29 = vadd.f32 1.0, %v3225_v15  ;;  %v1892_v20 = vadd.f32 %v3922_v57, %v2849_v13 }
 0x169   :  { %v3229_v28 = vpop.eup %3228  ;;  %2524 = vst [vmem:[%s4051_s5 + $0x180] sm:$0xff] %v2460_v11  ;;  %v2463_v24 = vmul.f32 %v3227_v14, %v1880_v48  ;;  %v814_v16 = vpop.f32.mrf.mxu0 }
 0x16a   :  { %v3231_v54 = vpop.eup %3230  ;;  %3252 = vrcp.f32 %v2276_v29  ;;  %v2279_v23 = vadd.f32 1.0, %v3229_v28  ;;  %v1890_v44 = vadd.f32 %v3922_v57, %v814_v16 }
 0x16b   :  { %v3233_v42 = vpop.eup %3232  ;;  %2527 = vst [vmem:[%s4051_s5 + $0x198] sm:$0xff] %v2463_v24  ;;  %v2461_v30 = vmul.f32 %v3231_v54, %v1878_v12 }
 0x16c   :  { %v3235_v50 = vpop.eup %3234  ;;  %3254 = vrcp.f32 %v2279_v23  ;;  %v2277_v51 = vadd.f32 1.0, %v3233_v42 }
 0x16d   :  { %v3237_v25 = vpop.eup %3236  ;;  %2525 = vst [vmem:[%s4051_s5 + $0x188] sm:$0xff] %v2461_v30  ;;  %v2466_v52 = vmul.f32 %v3235_v50, %v1883_v22 }
 0x16e   :  { %v3239_v33 = vpop.eup %3238  ;;  %3256 = vrcp.f32 %v2277_v51  ;;  %v2282_v49 = vadd.f32 1.0, %v3237_v25 }
 0x16f   :  { %v3241_v60 = vpop.eup %3240  ;;  %2530 = vst [vmem:[%s4051_s5 + $0x1b0] sm:$0xff] %v2466_v52  ;;  %v2464_v46 = vmul.f32 %v3239_v33, %v1881_v40 }
 0x170   :  { %v3243_v45 = vpop.eup %3242  ;;  %3258 = vrcp.f32 %v2282_v49  ;;  %v2280_v36 = vadd.f32 1.0, %v3241_v60 }
 0x171   :  { %v3245_v37 = vpop.eup %3244  ;;  %2528 = vst [vmem:[%s4051_s5 + $0x1a0] sm:$0xff] %v2464_v46  ;;  %v2467_v10 = vmul.f32 %v3243_v45, %v1884_v31 }
 0x172   :  { %v3247_v34 = vpop.eup %3246  ;;  %3260 = vrcp.f32 %v2280_v36  ;;  %v2283_v38 = vadd.f32 1.0, %v3245_v37 }
 0x173   :  { %v3249_v62 = vpop.eup %3248  ;;  %2531 = vst [vmem:[%s4051_s5 + $0x1b8] sm:$0xff] %v2467_v10  ;;  %v2465_v35 = vmul.f32 %v3247_v34, %v1882_v41 }
 0x174   :  { %3262 = vrcp.f32 %v2283_v38  ;;  %v2281_v6 = vadd.f32 1.0, %v3249_v62 }
 0x175   :  { %v3251_v47 = vpop.eup %3250  ;;  %2529 = vst [vmem:[%s4051_s5 + $0x1a8] sm:$0xff] %v2465_v35 }
 0x176   :  { %3264 = vrcp.f32 %v2281_v6  ;;  %v2470_v43 = vmul.f32 %v3251_v47, %v1887_v61 }
 0x177   :  { %v3253_v53 = vpop.eup %3252 }
 0x178   :  { %2534 = vst [vmem:[%s4051_s5 + $0x1d0] sm:$0xff] %v2470_v43  ;;  %v2468_v58 = vmul.f32 %v3253_v53, %v1885_v32 }
 0x179   :  { %v3255_v7 = vpop.eup %3254 }
 0x17a   :  { %2532 = vst [vmem:[%s4051_s5 + $0x1c0] sm:$0xff] %v2468_v58  ;;  %v2471_v17 = vmul.f32 %v3255_v7, %v1888_v4 }
 0x17b   :  { %v3257_v55 = vpop.eup %3256 }
 0x17c   :  { %2535 = vst [vmem:[%s4051_s5 + $0x1d8] sm:$0xff] %v2471_v17  ;;  %v2469_v5 = vmul.f32 %v3257_v55, %v1886_v8 }
 0x17d   :  { %v3259_v63 = vpop.eup %3258 }
 0x17e   :  { %2533 = vst [vmem:[%s4051_s5 + $0x1c8] sm:$0xff] %v2469_v5  ;;  %v2474_v9 = vmul.f32 %v3259_v63, %v1891_v1 }
 0x17f   :  { %v3261_v3 = vpop.eup %3260 }
 0x180   :  { %2538 = vst [vmem:[%s4051_s5 + $0x1f0] sm:$0xff] %v2474_v9  ;;  %v2472_v18 = vmul.f32 %v3261_v3, %v1889_v0 }
 0x181   :  { %v3263_v26 = vpop.eup %3262 }
 0x182   :  { %2536 = vst [vmem:[%s4051_s5 + $0x1e0] sm:$0xff] %v2472_v18  ;;  %v2475_v21 = vmul.f32 %v3263_v26, %v1892_v20 }
 0x183   :  { %v3265_v27 = vpop.eup %3264 }
 0x184   :  { %2539 = vst [vmem:[%s4051_s5 + $0x1f8] sm:$0xff] %v2475_v21  ;;  %v2473_v15 = vmul.f32 %v3265_v27, %v1890_v44 }
 0x186   :  { %2537 = vst [vmem:[%s4051_s5 + $0x1e8] sm:$0xff] %v2473_v15 }

</bundles_post_ra>
